<compile_context>
chip_gen: v7x
topology: tpu7x:2x2x1
jax: 0.10.0
libtpu: 0.0.40
codegen_flags: <defaults>
</compile_context>

<pallas_src>
import jax
import jax.numpy as jnp
from jax.experimental import pallas as pl
from jax.experimental.pallas import tpu as pltpu


# ----------------------------- kernels --------------------------------------

def _drop_path_kernel(scale_ref, x_ref, o_ref):
    # scale_ref: (block_b, 1) f32 per-sample scale (0 or 1/keep_prob)
    # x_ref/o_ref: (block_b, block_c) tile of the flattened input/output
    x = x_ref[...].astype(jnp.float32)
    o_ref[...] = (x * scale_ref[...]).astype(o_ref.dtype)


def _drop_path_add_kernel(scale_ref, x_ref, res_ref, o_ref):
    # Fused residual add: o = res + x * scale  (the `x + drop_path(block(x))`
    # pattern in every CaiT block).
    x = x_ref[...].astype(jnp.float32)
    r = res_ref[...].astype(jnp.float32)
    o_ref[...] = (r + x * scale_ref[...]).astype(o_ref.dtype)


# ----------------------------- tiling ---------------------------------------

def _round_up(n, m):
    return -(-n // m) * m


def _tpu_budgets():
    """(max_tile_bytes, vmem_limit_bytes) tuned per TPU generation."""
    try:
        kind = jax.devices()[0].device_kind.lower()
    except Exception:
        kind = ""
    if "v5 lite" in kind or "v5e" in kind or "v5lite" in kind:
        # 0.82 TB/s HBM: 2 MiB tiles already put per-step overhead < ~7%.
        return 2 * 1024 * 1024, 40 * 1024 * 1024
    if "v7" in kind:
        # 3.2 TB/s HBM, 64 MiB physical VMEM: bigger tiles, explicit limit.
        return 6 * 1024 * 1024, 44 * 1024 * 1024
    # v6e and default (v4/v5p): 4 MiB tiles land on the ~85% roofline plateau.
    return 4 * 1024 * 1024, 40 * 1024 * 1024


def _choose_tiles(B, C, itemsize, max_tile_bytes):
    """Pick (block_b, block_c) for the flattened (B, C) view."""
    # Sublane minimum for this dtype (f32: 8, bf16: 16, int8/fp8: 32); the
    # VMEM block is physically padded to (sublane, 128) tiles, so the byte
    # budget must be computed on the padded shape.
    sublane = max(8, 32 // itemsize)

    block_b = B if B <= 64 else 64                    # full B or multiple of 8
    padded_b = _round_up(block_b, sublane)

    # Lane dim: full C when its padded tile fits the budget, else the largest
    # multiple of 128 that does (keeps stores unmasked full-lane `vst`).
    budget_c = max(128, (max_tile_bytes // (padded_b * itemsize)) // 128 * 128)
    padded_C = _round_up(C, 128)
    block_c = C if padded_C <= budget_c else min(budget_c, padded_C)

    # Never let the grid collapse to 1-2 steps for tensors much bigger than a
    # tile: without multiple steps there is no software pipelining and (on
    # v7x) the second TensorCore idles.
    total_padded = _round_up(B, sublane) * padded_C * itemsize
    if total_padded > 2 * max_tile_bytes:
        while pl.cdiv(B, block_b) * pl.cdiv(C, block_c) < 4:
            if block_c > 128:
                block_c = max(128, ((block_c // 2) // 128) * 128)
            elif block_b > 8:
                block_b = max(8, ((block_b // 2) // 8) * 8)
            else:
                break
    return block_b, block_c


# ----------------------------- wrapper ---------------------------------------

def drop_path_pallas(x, key, drop_prob: float = 0.0, training: bool = False,
                     scale_by_keep: bool = True, *, residual=None,
                     donate_x: bool = False):
    """Exact semantics of timm/CaiT drop_path().

    If `residual` is given, returns residual + drop_path(x) fused in one pass.
    If `donate_x` is True, the output aliases x's HBM buffer (caller donates x).
    """
    if residual is not None and residual.shape != x.shape:
        raise ValueError("residual must have the same shape as x")

    if drop_prob == 0.0 or not training:
        return x if residual is None else (residual + x).astype(x.dtype)

    keep_prob = 1.0 - drop_prob
    orig_shape = x.shape
    B = x.shape[0]
    C = 1
    for d in x.shape[1:]:
        C *= int(d)
    x2 = x.reshape(B, C)

    # Per-sample Bernoulli draw + scale, computed once in f32 in the wrapper
    # (tiny: B values). The heavy broadcast-multiply runs in the kernel.
    keep = jax.random.bernoulli(key, p=keep_prob, shape=(B,))
    inv_keep = (1.0 / keep_prob) if (keep_prob > 0.0 and scale_by_keep) else 1.0
    scale = (keep.astype(jnp.float32) * jnp.float32(inv_keep)).reshape(B, 1)

    itemsize = jnp.dtype(x.dtype).itemsize
    max_tile_bytes, vmem_limit = _tpu_budgets()
    block_b, block_c = _choose_tiles(B, C, itemsize, max_tile_bytes)
    grid = (pl.cdiv(B, block_b), pl.cdiv(C, block_c))

    tile_spec = pl.BlockSpec((block_b, block_c), lambda i, j: (i, j))
    scale_spec = pl.BlockSpec((block_b, 1), lambda i, j: (i, 0))

    operands = [scale, x2]
    in_specs = [scale_spec, tile_spec]
    kernel = _drop_path_kernel
    n_big = 2                                    # x + out
    if residual is not None:
        operands.append(residual.reshape(B, C))
        in_specs.append(tile_spec)
        kernel = _drop_path_add_kernel
        n_big = 3                                # x + res + out

    cost = pl.CostEstimate(
        flops=(n_big - 1) * B * C,
        transcendentals=0,
        bytes_accessed=n_big * B * C * itemsize + B * 4,
    )

    out2 = pl.pallas_call(
        kernel,
        out_shape=jax.ShapeDtypeStruct((B, C), x.dtype),
        grid=grid,
        in_specs=in_specs,
        out_specs=tile_spec,
        compiler_params=pltpu.CompilerParams(
            dimension_semantics=("parallel", "parallel"),
            vmem_limit_bytes=vmem_limit),
        cost_estimate=cost,
        input_output_aliases=({1: 0} if donate_x else {}),
    )(*operands)

    return out2.reshape(orig_shape)


class DropPath:
    """Mirror of the PyTorch module (no learnable params)."""

    def __init__(self, drop_prob: float = 0.0, scale_by_keep: bool = True):
        self.drop_prob = drop_prob
        self.scale_by_keep = scale_by_keep
        self.training = True

    def __call__(self, x, key, residual=None):
        return drop_path_pallas(x, key, self.drop_prob, self.training,
                                self.scale_by_keep, residual=residual)


# ----------------------------- reference & test ------------------------------

def _reference(x, key, drop_prob, scale_by_keep=True, residual=None):
    keep_prob = 1.0 - drop_prob
    keep = jax.random.bernoulli(key, p=keep_prob, shape=(x.shape[0],))
    inv = (1.0 / keep_prob) if (keep_prob > 0.0 and scale_by_keep) else 1.0
    scale = (keep.astype(jnp.float32) * jnp.float32(inv)).reshape(
        (x.shape[0],) + (1,) * (x.ndim - 1))
    y = x.astype(jnp.float32) * scale
    if residual is not None:
        y = residual.astype(jnp.float32) + y
    return y.astype(x.dtype)


if __name__ == "__main__":
    root = jax.random.PRNGKey(0)
    k_x, k_m, k_x2, k_m2, k_r, k_x3, k_m3 = jax.random.split(root, 7)

    # 1) Small ViT-like token tensor: batch=2, seq=8, hidden=32.
    x = jax.random.normal(k_x, (2, 8, 32), dtype=jnp.float32)
    module = DropPath(drop_prob=0.25, scale_by_keep=True)
    module.training = True
    out = jax.block_until_ready(module(x, k_m))
    ref = _reference(x, k_m, module.drop_prob, module.scale_by_keep)
    assert out.shape == x.shape and out.dtype == x.dtype
    assert jnp.allclose(out, ref, atol=1e-6, rtol=1e-6)

    # 2) CaiT-S24-like shape in bf16 with the fused residual add (hot path).
    x2 = jax.random.normal(k_x2, (4, 197, 384), dtype=jnp.bfloat16)
    res = jax.random.normal(k_r, (4, 197, 384), dtype=jnp.bfloat16)
    out2 = jax.block_until_ready(
        drop_path_pallas(x2, k_m2, 0.1, True, True, residual=res))
    ref2 = _reference(x2, k_m2, 0.1, True, residual=res)
    assert out2.dtype == jnp.bfloat16
    assert jnp.allclose(out2.astype(jnp.float32), ref2.astype(jnp.float32),
                        atol=1e-2, rtol=1e-2)

    # 3) Medium f32 tensor: exercises the multi-step grid (pipelining /
    #    min-steps rule) and the x-donation alias.
    x3 = jax.random.normal(k_x3, (32, 197, 384), dtype=jnp.float32)
    ref3 = _reference(x3, k_m3, 0.1, True)
    out3 = jax.block_until_ready(
        drop_path_pallas(x3, k_m3, 0.1, True, True, donate_x=True))
    assert jnp.allclose(out3, ref3, atol=1e-6, rtol=1e-6)

    # 4) Eval / drop_prob=0 fast path returns x unchanged.
    module.training = False
    out_eval = jax.block_until_ready(module(x, k_m))
    assert jnp.array_equal(out_eval, x)

    print("KERNEL_OK")
</pallas_src>

<mosaic_0001>
module attributes {stable_mosaic.version = 11 : i64} {
  func.func @_drop_path_kernel(%arg0: i32, %arg1: i32, %arg2: memref<2x1xf32, #tpu.memory_space<vmem>>, %arg3: memref<2x256xf32, #tpu.memory_space<vmem>>, %arg4: memref<2x256xf32, #tpu.memory_space<vmem>>) attributes {dimension_semantics = [#tpu.dimension_semantics<parallel>, #tpu.dimension_semantics<parallel>], iteration_bounds = array<i64: 1, 1>, scalar_prefetch = 0 : i64, scratch_operands = 0 : i64, tpu.core_type = #tpu.core_type<tc>, window_params = [{transform_indices = @transform_0, window_bounds = array<i64: 2, 1>}, {transform_indices = @transform_1, window_bounds = array<i64: 2, 256>}, {transform_indices = @transform_2, window_bounds = array<i64: 2, 256>}]} {
    %c0 = arith.constant 0 : index
    %c0_0 = arith.constant 0 : index
    %0 = vector.load %arg3[%c0, %c0_0] : memref<2x256xf32, #tpu.memory_space<vmem>>, vector<2x256xf32>
    %c0_1 = arith.constant 0 : index
    %c0_2 = arith.constant 0 : index
    %1 = vector.load %arg2[%c0_1, %c0_2] : memref<2x1xf32, #tpu.memory_space<vmem>>, vector<2x1xf32>
    %2 = vector.broadcast %1 : vector<2x1xf32> to vector<2x256xf32>
    %3 = arith.mulf %0, %2 : vector<2x256xf32>
    %c0_3 = arith.constant 0 : index
    %c0_4 = arith.constant 0 : index
    %4 = vector.load %arg4[%c0_3, %c0_4] : memref<2x256xf32, #tpu.memory_space<vmem>>, vector<2x256xf32>
    tpu.vector_store %arg4[%c0_3, %c0_4], %3 {strides = array<i32>} : memref<2x256xf32, #tpu.memory_space<vmem>>, vector<2x256xf32>,
    return
  }
  func.func @transform_0(%arg0: i32, %arg1: i32) -> (i32, i32) {
    %c0_i32 = arith.constant 0 : i32
    %c0_i32_0 = arith.constant 0 : i32
    return %arg0, %c0_i32 : i32, i32
  }
  func.func @transform_1(%arg0: i32, %arg1: i32) -> (i32, i32) {
    %c0_i32 = arith.constant 0 : i32
    return %arg0, %arg1 : i32, i32
  }
  func.func @transform_2(%arg0: i32, %arg1: i32) -> (i32, i32) {
    %c0_i32 = arith.constant 0 : i32
    return %arg0, %arg1 : i32, i32
  }
}

</mosaic_0001>

<bundles_post_ra>
// kernel: tpu_custom_call.1
= control target key start
LH: loop header
LB: loop body
LE: loop exit
PB: predicated region body
PF: predicated region fallthrough
CT: control target
= control target key end

     0   :  { %v70_v1 = vmov 0   ;;  %s106_s0 = inlined_call_operand.vmem [shape: f32[2,1], index: 0, kind: input, shape index: {}]   ;;  %s107_s1 = inlined_call_operand.vmem [shape: f32[2,256], index: 1, kind: input, shape index: {}]   ;;  %s108_s2 = inlined_call_operand.hbm [shape: f32[2,256], index: 2, kind: output, shape index: {}]  }
   0x1   :  { %v13_v0 = vld [vmem:[%s106_s0] sm:$0x3]  ;;  %45 = vset.pattern.permute.xlu0 %v70_v1 }
   0x2   :  { %7 = vsyncpa [#allocation3], 0  ;;  %16 = vperm.xlu0 %45, %v13_v0   ;;  %v71_v2 = vmov 269488144   ;;  %v21_v4 = vlaneseq  ;;  %v12_v9 = vld [vmem:[%s107_s1] sm:$0xf] }
   0x3   :  { %v19_v3 = vunpack.c.l.s4 %v71_v2  ;;  %s72_s13 = smov [#allocation2]  }
   0x4   :  { %v22_v6 = vshrl.u32 %v21_v4, 7  ;;  %s34_s14 = sshll.u32 %s72_s13, 4  ;;  %s35_s14 = int_to_ptr.vmem [resolvable:$true] %s34_s14 }
   0x5   :  { %v20_v5 = vunpack.c.0.s8 %v19_v3  ;;  %s46_s0 = scalar_lea.vmem %s35_s14, 64  ;;  %p51_p1 = scmp.lt.s32.totalorder %s35_s14, %s35_s14 }
   0x6   :  { %p47_p0 = scmp.ne.s32.totalorder %s35_s14, %s46_s0  ;;  %p52_p2 = scmp.lt.s32.totalorder %s46_s0, %s46_s0 }
   0x7   :  { %v23_v7 = vsub.s32 %v20_v5, %v22_v6 }
   0x8   :  { %p53_p3 = por %p52_p2, %p51_p1 }
   0xa   :  { %p54_p4 = pnand %p53_p3, %p47_p0 }
  0x81   :  { %v17_v8 = vpop.permute.xlu0 %16 }
  0x82   :  { %v24_v10 = vrot.slane %v17_v8, %v23_v7 }
  0x84   :  { %v26_v11 = vmul.f32 %v24_v10, %v12_v9 }
  0x86   :  { %27 = vst [vmem:[#allocation2] sm:$0xf] %v26_v11 }
  0x87   :  { %57 = shalt.err (!%p54_p4)
}
  0x88   :  { %s58_s17 = scalar_lea.hbm %s108_s2, 64 }
  0x89   :  { %p59_p5 = scmp.ne.s32.totalorder %s108_s2, %s58_s17  ;;  %p62_p6 = scmp.lt.u32.totalorder %s58_s17, %s108_s2 }
  0x8b   :  { %p64_p7 = pnand %p62_p6, %p59_p5 }
  0x8d   :  { %67 = shalt.err (!%p64_p7)
}
  0x8e   :  { %37 = dma.vmem_to_hbm [thread:$0]  %s35_s14, 64, %s108_s2, [#allocation3]  }
  0x8f   :  { %68 = dma.done.wait [#allocation3], 64  }
  0x90   :  { %69 = vsyncadd [#allocation3], 4294967232 }
  0x91   :  { %41 = vsyncpa [#allocation3], 1 }

</bundles_post_ra>
